<compile_context>
chip_gen: v6e
topology: v6e:2x2x1
jax: 0.10.0
libtpu: 0.0.40
codegen_flags: <defaults>
</compile_context>

<pallas_src>
import numpy as np
import jax
import jax.numpy as jnp
from jax import lax
from jax.experimental import pallas as pl
from jax.experimental.pallas import tpu as pltpu

EPS = 1e-5                 # nn.BatchNorm1d default eps
MXU_DTYPE = jnp.bfloat16   # MXU input dtype; accumulation / BN stay f32


# -----------------------------------------------------------------------------
# Fused conv backbone kernel:  [Conv1d -> BatchNorm1d(train) -> ReLU] x n_stages
# -----------------------------------------------------------------------------
def _vmem_physical_bytes():
    """Per-core physical VMEM; conservative v7x (64 MiB) fallback."""
    try:
        info = pltpu.get_tpu_info()
        cap = getattr(info, "vmem_capacity_bytes", None)
        if cap:
            return int(cap)
    except Exception:
        pass
    return 64 * 2**20


def _make_fused_backbone_kernel(cfg, batch, n_scratch):
    """cfg: list of per-stage static geometry dicts
         {K, dil, stride, cin, cout, lout, pad_next}
    Ref order seen by the kernel:
      x_ref                      (N, Lp0, C0)            bf16   padded input, NLC
      [w_ref_s, bn_ref_s] * S    (K*Cin, Cout) bf16 / (2, Cout) f32
      o_ref                      (N, Lout_last, C_last)  f32
      [z_ref] * n_scratch        (N, Lmax, Cmax) bf16    ping-pong VMEM scratch
    """
    n_stages = len(cfg)

    def kernel(*refs):
        x_ref = refs[0]
        w_refs = [refs[1 + 2 * s] for s in range(n_stages)]
        bn_refs = [refs[2 + 2 * s] for s in range(n_stages)]
        o_ref = refs[1 + 2 * n_stages]
        z_refs = list(refs[2 + 2 * n_stages:])

        cur_ref = x_ref
        for s, st in enumerate(cfg):
            K, dil, stride = st["K"], st["dil"], st["stride"]
            cin, cout, lout = st["cin"], st["cout"], st["lout"]

            # ---- Conv1d: K shifted windows concatenated along channels, then ONE
            #      (N*lout, K*cin) x (K*cin, cout) MXU matmul with f32 accumulation.
            taps = []
            for k in range(K):
                start = k * dil
                if stride == 1:
                    rows = pl.ds(start, lout)
                else:
                    # TODO(synk): stride>1 strided VMEM reads are untested on Mosaic.
                    rows = pl.ds(start, lout, stride)
                taps.append(cur_ref[:, rows, pl.ds(0, cin)])      # (N, lout, cin) bf16
            xcat = jnp.concatenate(taps, axis=2) if K > 1 else taps[0]
            xflat = xcat.reshape(batch * lout, K * cin)           # M = N*lout rows
            acc = jnp.dot(xflat, w_refs[s][...],
                          preferred_element_type=jnp.float32)     # (N*lout, cout) f32
            # NOTE: conv bias intentionally omitted — a per-channel constant added
            # before train-mode BatchNorm cancels exactly.

            # ---- BatchNorm1d (training: biased batch stats over N*lout) + ReLU, f32
            inv_cnt = 1.0 / float(batch * lout)
            mean = jnp.sum(acc, axis=0, keepdims=True) * inv_cnt          # (1, cout)
            cent = acc - mean
            var = jnp.sum(cent * cent, axis=0, keepdims=True) * inv_cnt   # (1, cout)
            bn = bn_refs[s][...]                                          # (2, cout) f32
            scale = bn[0:1, :] * lax.rsqrt(var + EPS)                     # gamma folded in
            y = jnp.maximum(cent * scale + bn[1:2, :], 0.0)               # ReLU

            if s + 1 < n_stages:
                z_ref = z_refs[s % n_scratch]                    # ping-pong VMEM buffer
                pad_next = st["pad_next"]
                y3 = y.reshape(batch, lout, cout).astype(z_ref.dtype)
                if pad_next > 0:
                    # Zero only the halo rows (not the whole buffer).
                    halo = jnp.zeros((batch, pad_next, z_ref.shape[2]), z_ref.dtype)
                    z_ref[:, pl.ds(0, pad_next), :] = halo
                    z_ref[:, pl.ds(pad_next + lout, pad_next), :] = halo
                z_ref[:, pl.ds(pad_next, lout), pl.ds(0, cout)] = y3
                cur_ref = z_ref                                  # stays in VMEM
            else:
                o_ref[...] = y.reshape(batch, lout, cout).astype(o_ref.dtype)

    return kernel


def fused_conv_backbone(x_ncl, conv_params, *, kernel_size, stride,
                        padding_ls, dilation_ls):
    """x_ncl: (N, C0, L) float32 in the PyTorch Conv1d layout.
    conv_params: per stage (w_flat bf16 (K*Cin, Cout), bn f32 (2, Cout)).
    Returns the backbone activation in NLC layout: (N, L_out, C_last) float32."""
    N, _, L = x_ncl.shape
    K = kernel_size
    n_stages = len(conv_params)

    # Per-stage output lengths (same formula as backbone_model.cal_out_shape).
    louts, lcur = [], L
    for s in range(n_stages):
        lcur = (lcur + 2 * padding_ls[s] - dilation_ls[s] * (K - 1) - 1) // stride + 1
        louts.append(lcur)

    cfg = []
    for s in range(n_stages):
        kcin, cout = conv_params[s][0].shape
        cfg.append(dict(
            K=K, dil=dilation_ls[s], stride=stride,
            cin=kcin // K, cout=cout, lout=louts[s],
            pad_next=padding_ls[s + 1] if s + 1 < n_stages else 0))

    # NCL -> NLC, pad the length dim for stage 0, cast to bf16 (MXU input).
    p0 = padding_ls[0]
    x_nlc = jnp.transpose(x_ncl, (0, 2, 1)).astype(MXU_DTYPE)
    x_pad = jnp.pad(x_nlc, ((0, 0), (p0, p0), (0, 0)))

    # Operands: padded input + (packed tap-major weight, packed gamma/beta) per stage.
    operands = [x_pad]
    for w_flat, bn in conv_params:
        operands += [w_flat, bn]

    c_last = cfg[-1]["cout"]
    out_sds = jax.ShapeDtypeStruct((N, louts[-1], c_last), jnp.float32)

    # Inter-stage activations live in (at most 2) ping-pong VMEM scratch buffers
    # sized for the largest intermediate stage (incl. the next stage's halo).
    scratch_shapes, scratch_bytes, n_scratch = [], 0, 0
    if n_stages > 1:
        lmax = max(cfg[s]["lout"] + 2 * cfg[s]["pad_next"] for s in range(n_stages - 1))
        cmax = max(cfg[s]["cout"] for s in range(n_stages - 1))
        n_scratch = min(2, n_stages - 1)
        scratch_shapes = [pltpu.VMEM((N, lmax, cmax), MXU_DTYPE)
                          for _ in range(n_scratch)]
        scratch_bytes = n_scratch * N * lmax * cmax * 2

    # VMEM budget: gridless call => operands single-buffered; keep headroom for
    # compiler-internal scratch (cap at ~85% of physical VMEM).
    est = sum(int(a.size) * a.dtype.itemsize for a in operands)
    est += int(np.prod(out_sds.shape)) * 4
    est += scratch_bytes
    cap = int(0.85 * _vmem_physical_bytes())
    vmem_limit = int(min(cap, max(32 * 2**20, 2 * est)))
    # TODO(synk): when 2*est exceeds the cap, switch to an R-tiled grid with
    # two-pass BN stats and a 'parallel' batch axis (uses v7x's second TC).

    kernel = _make_fused_backbone_kernel(cfg, N, n_scratch)
    return pl.pallas_call(
        kernel,
        out_shape=out_sds,
        scratch_shapes=scratch_shapes,
        compiler_params=pltpu.CompilerParams(vmem_limit_bytes=vmem_limit),
    )(*operands)


# -----------------------------------------------------------------------------
# Tower glue (plain JAX): fused 2-layer GRU scan + Linear(w,1) + Linear(1+n,1)
# TODO(synk): the GRU recurrence is strictly sequential over a tiny (N, 40)
# state; it stays as a single fused lax.scan rather than a Pallas kernel.
# -----------------------------------------------------------------------------
def _gru_cell(h, gi, w_hh, b_hh):
    gh = h @ w_hh.T + b_hh
    i_r, i_z, i_n = jnp.split(gi, 3, axis=-1)
    h_r, h_z, h_n = jnp.split(gh, 3, axis=-1)
    r = jax.nn.sigmoid(i_r + h_r)
    z = jax.nn.sigmoid(i_z + h_z)
    n = jnp.tanh(i_n + r * h_n)
    return (1.0 - z) * n + z * h


def gru_2layer_last_hidden(x_nlc, p0, p1):
    """PyTorch-compatible 2-layer GRU, both layers fused in one scan.
    Returns the final hidden state of the top layer (PyTorch's c2)."""
    w_ih0, w_hh0, b_ih0, b_hh0 = p0
    w_ih1, w_hh1, b_ih1, b_hh1 = p1
    N, _, _ = x_nlc.shape
    H = w_hh0.shape[1]
    xt = jnp.transpose(x_nlc, (1, 0, 2))                       # (L, N, C)
    gi0_all = jnp.einsum("lnc,gc->lng", xt, w_ih0) + b_ih0     # hoisted input projection

    def step(carry, gi0):
        h0, h1 = carry
        h0 = _gru_cell(h0, gi0, w_hh0, b_hh0)
        gi1 = h0 @ w_ih1.T + b_ih1
        h1 = _gru_cell(h1, gi1, w_hh1, b_hh1)
        return (h0, h1), None

    init = (jnp.zeros((N, H), jnp.float32), jnp.zeros((N, H), jnp.float32))
    (_, h1_last), _ = lax.scan(step, init, gi0_all)
    return h1_last


# -----------------------------------------------------------------------------
# Parameter init (matches the PyTorch module structure)
# -----------------------------------------------------------------------------
def _init_params(conv_args, tower_width, n_covar, tasks, key):
    channel_ls, K, _, _, _, _ = conv_args
    conv_params, conv_w_f32, conv_biases = [], [], []
    for cin, cout in zip(channel_ls[:-1], channel_ls[1:]):
        key, k1, k2 = jax.random.split(key, 3)
        w = jax.random.normal(k1, (cout, cin, K), jnp.float32) / np.sqrt(cin * K)
        conv_w_f32.append(w)
        # Conv bias kept for parameter parity with nn.Conv1d but NOT used in the
        # kernel: it cancels exactly under train-mode BatchNorm.
        conv_biases.append(0.01 * jax.random.normal(k2, (cout,), jnp.float32))
        # Pack tap-major: row k*cin + c  <->  W_torch[:, c, k]   ->  (K*Cin, Cout)
        w_flat = jnp.transpose(w, (2, 1, 0)).reshape(K * cin, cout).astype(MXU_DTYPE)
        bn = jnp.stack([jnp.ones((cout,), jnp.float32),                # gamma
                        jnp.zeros((cout,), jnp.float32)])              # beta -> (2, Cout)
        conv_params.append((w_flat, bn))

    def unif(kk, shape, fan):
        lim = 1.0 / np.sqrt(fan)
        return jax.random.uniform(kk, shape, jnp.float32, -lim, lim)

    towers = {}
    c_last, H = channel_ls[-1], tower_width
    for t in tasks:
        key, *ks = jax.random.split(key, 11)
        towers[t] = dict(
            gru0=(unif(ks[0], (3 * H, c_last), H), unif(ks[1], (3 * H, H), H),
                  unif(ks[2], (3 * H,), H),        unif(ks[3], (3 * H,), H)),
            gru1=(unif(ks[4], (3 * H, H), H),      unif(ks[5], (3 * H, H), H),
                  unif(ks[6], (3 * H,), H),        unif(ks[7], (3 * H,), H)),
            lin1=(unif(ks[8], (1, H), H), jnp.zeros((1,), jnp.float32)),
            lin2=(unif(ks[9], (1, 1 + n_covar), 1 + n_covar), jnp.zeros((1,), jnp.float32)),
        )
    return conv_params, conv_w_f32, conv_biases, towers


# -----------------------------------------------------------------------------
# Model
# -----------------------------------------------------------------------------
class RLCovarInterceptPallas:
    """JAX/Pallas equivalent of MTtrans RL_covar_intercept.forward."""

    def __init__(self, conv_args, tower_width=40, dropout_rate=0.2, activation="ReLU",
                 n_covar=1, tasks=("unmod1", "human", "vleng"), key=None):
        assert activation == "ReLU"
        (self.channel_ls, self.kernel_size, self.stride,
         self.padding_ls, self.diliation_ls, self.pad_to) = conv_args
        self.all_tasks = list(tasks)
        self.task = self.all_tasks[0]
        self.n_covar = int(n_covar)
        self.tower_width = int(tower_width)
        if key is None:
            key = jax.random.PRNGKey(0)
        (self.conv_params, self.conv_w_f32, self.conv_biases,
         self.towers) = _init_params(conv_args, self.tower_width, self.n_covar,
                                     self.all_tasks, key)
        self.stage = list(range(len(self.channel_ls) - 1))
        self.out_length = self._last_out_len(self.pad_to)
        self.out_dim = self.out_length * self.channel_ls[-1]

    def _cal_out_shape(self, L, pad, dil):
        return int(np.floor((L + 2 * pad - dil * (self.kernel_size - 1) - 1)
                            / self.stride + 1))

    def _last_out_len(self, L):
        for p, d in zip(self.padding_ls, self.diliation_ls):
            L = self._cal_out_shape(L, p, d)
        return L

    # Fused Pallas backbone, returned directly in the NLC layout the GRU needs
    # (saves the NLC->NCL->NLC transpose pair of the PyTorch forward).
    def soft_share_nlc(self, x_ncl):
        return fused_conv_backbone(
            x_ncl, self.conv_params,
            kernel_size=self.kernel_size, stride=self.stride,
            padding_ls=self.padding_ls, dilation_ls=self.diliation_ls)

    def soft_share(self, x_ncl):
        # PyTorch Conv1d_block output layout (N, C_last, L_out).
        return jnp.transpose(self.soft_share_nlc(x_ncl), (0, 2, 1))

    def __call__(self, X, task=None):
        # TODO(synk): BatchNorm running-stat updates (training-time side effect)
        # are not replicated; normalization uses exact batch statistics.
        task = self.task if task is None else task
        x_seq, x_covar = X
        assert x_covar.shape[1] == self.n_covar
        z_nlc = self.soft_share_nlc(x_seq)                    # (N, L_out, C_last)
        p = self.towers[task]
        c2 = gru_2layer_last_hidden(z_nlc, p["gru0"], p["gru1"])
        intercept = c2 @ p["lin1"][0].T + p["lin1"][1]        # (N, 1)
        linear_factor = jnp.concatenate(
            [intercept, x_covar.astype(intercept.dtype)], axis=1)
        out = linear_factor @ p["lin2"][0].T + p["lin2"][1]   # (N, 1)
        return out


# -----------------------------------------------------------------------------
# Pure-JAX reference backbone (for a correctness smoke test of the kernel)
# -----------------------------------------------------------------------------
def _reference_backbone_nlc(x_ncl, conv_w_f32, conv_biases, padding_ls,
                            dilation_ls, stride):
    x = x_ncl
    for w, b, pad, dil in zip(conv_w_f32, conv_biases, padding_ls, dilation_ls):
        x = lax.conv_general_dilated(
            x.astype(MXU_DTYPE), w.astype(MXU_DTYPE),
            window_strides=(stride,), padding=[(pad, pad)],
            rhs_dilation=(dil,),
            dimension_numbers=("NCH", "OIH", "NCH"),
            preferred_element_type=jnp.float32)
        x = x + b[None, :, None]                               # bias (cancels under BN)
        mean = jnp.mean(x, axis=(0, 2), keepdims=True)
        var = jnp.mean(jnp.square(x - mean), axis=(0, 2), keepdims=True)
        x = jnp.maximum((x - mean) * lax.rsqrt(var + EPS), 0.0)  # gamma=1, beta=0
    return jnp.transpose(x, (0, 2, 1))


if __name__ == "__main__":
    # conv_args = (channel_ls, kernel_size, stride, padding_ls, diliation_ls, pad_to)
    conv_args = ([4, 16, 32], 3, 1, [1, 1], [1, 1], 16)
    model = RLCovarInterceptPallas(conv_args, tower_width=40, n_covar=1)

    key = jax.random.PRNGKey(0)
    kx, kc = jax.random.split(key)
    x_seq = jax.random.normal(kx, (2, 4, 16), jnp.float32)    # (N, C, L) as in PyTorch
    x_covar = jax.random.normal(kc, (2, 1), jnp.float32)      # (N, n_covar)

    # Backbone (the fused Pallas kernel) sanity + correctness checks.
    z_nlc = jax.block_until_ready(model.soft_share_nlc(x_seq))
    assert z_nlc.shape == (2, model.out_length, conv_args[0][-1]), z_nlc.shape
    assert bool(jnp.all(jnp.isfinite(z_nlc)))
    assert bool(jnp.all(z_nlc >= 0.0))        # ReLU output

    ref = _reference_backbone_nlc(x_seq, model.conv_w_f32, model.conv_biases,
                                  model.padding_ls, model.diliation_ls, model.stride)
    err = float(jnp.max(jnp.abs(z_nlc - ref)))
    assert err < 5e-2, f"backbone mismatch vs reference: max abs err = {err}"

    # Full RL_covar_intercept forward.
    out = jax.block_until_ready(model((x_seq, x_covar), task="unmod1"))
    assert out.shape == (2, 1), out.shape
    assert bool(jnp.all(jnp.isfinite(out)))
    print("KERNEL_OK")
</pallas_src>

<mosaic_0001>
module attributes {stable_mosaic.version = 11 : i64} {
  func.func @kernel(%arg0: memref<2x18x4xbf16, #tpu.memory_space<vmem>>, %arg1: memref<12x16xbf16, #tpu.memory_space<vmem>>, %arg2: memref<2x16xf32, #tpu.memory_space<vmem>>, %arg3: memref<48x32xbf16, #tpu.memory_space<vmem>>, %arg4: memref<2x32xf32, #tpu.memory_space<vmem>>, %arg5: memref<2x16x32xf32, #tpu.memory_space<vmem>>, %arg6: memref<2x18x16xbf16, #tpu.memory_space<vmem>>) attributes {dimension_semantics = [], scalar_prefetch = 0 : i64, scratch_operands = 1 : i64, tpu.core_type = #tpu.core_type<tc>} {
    %c0 = arith.constant 0 : index
    %c0_0 = arith.constant 0 : index
    %c0_1 = arith.constant 0 : index
    %0 = vector.load %arg0[%c0, %c0_0, %c0_1] : memref<2x18x4xbf16, #tpu.memory_space<vmem>>, vector<2x16x4xbf16>
    %c0_2 = arith.constant 0 : index
    %c1 = arith.constant 1 : index
    %c0_3 = arith.constant 0 : index
    %1 = vector.load %arg0[%c0_2, %c1, %c0_3] : memref<2x18x4xbf16, #tpu.memory_space<vmem>>, vector<2x16x4xbf16>
    %c0_4 = arith.constant 0 : index
    %c2 = arith.constant 2 : index
    %c0_5 = arith.constant 0 : index
    %2 = vector.load %arg0[%c0_4, %c2, %c0_5] : memref<2x18x4xbf16, #tpu.memory_space<vmem>>, vector<2x16x4xbf16>
    %3 = tpu.concatenate %0, %1, %2 in 2 : vector<2x16x4xbf16>, vector<2x16x4xbf16>, vector<2x16x4xbf16> -> vector<2x16x12xbf16>
    %4 = vector.shape_cast %3 : vector<2x16x12xbf16> to vector<32x12xbf16>
    %c0_6 = arith.constant 0 : index
    %c0_7 = arith.constant 0 : index
    %5 = vector.load %arg1[%c0_6, %c0_7] : memref<12x16xbf16, #tpu.memory_space<vmem>>, vector<12x16xbf16>
    %cst = arith.constant dense<0.000000e+00> : vector<32x16xf32>
    %6 = tpu.matmul %4, %5, %cst {dimension_numbers = #tpu.dot_dimension_numbers<[1], [0], [0], [1], [0, 0, 1, 1], [], []>} : vector<32x12xbf16>, vector<12x16xbf16>, vector<32x16xf32> -> vector<32x16xf32>
    %cst_8 = arith.constant dense<0.000000e+00> : vector<16xf32>
    %7 = vector.multi_reduction <add>, %6, %cst_8 [0] : vector<32x16xf32> to vector<16xf32>
    %8 = vector.shape_cast %7 : vector<16xf32> to vector<1x16xf32>
    %cst_9 = arith.constant 3.125000e-02 : f32
    %9 = vector.broadcast %cst_9 : f32 to vector<1x16xf32>
    %10 = arith.mulf %8, %9 : vector<1x16xf32>
    %11 = vector.broadcast %10 : vector<1x16xf32> to vector<32x16xf32>
    %12 = arith.subf %6, %11 : vector<32x16xf32>
    %13 = arith.mulf %12, %12 : vector<32x16xf32>
    %cst_10 = arith.constant dense<0.000000e+00> : vector<16xf32>
    %14 = vector.multi_reduction <add>, %13, %cst_10 [0] : vector<32x16xf32> to vector<16xf32>
    %15 = vector.shape_cast %14 : vector<16xf32> to vector<1x16xf32>
    %cst_11 = arith.constant 3.125000e-02 : f32
    %16 = vector.broadcast %cst_11 : f32 to vector<1x16xf32>
    %17 = arith.mulf %15, %16 : vector<1x16xf32>
    %c0_12 = arith.constant 0 : index
    %c0_13 = arith.constant 0 : index
    %18 = vector.load %arg2[%c0_12, %c0_13] : memref<2x16xf32, #tpu.memory_space<vmem>>, vector<2x16xf32>
    %19 = vector.extract_strided_slice %18 {offsets = [0, 0], sizes = [1, 16], strides = [1, 1]} : vector<2x16xf32> to vector<1x16xf32>
    %cst_14 = arith.constant 9.99999974E-6 : f32
    %20 = vector.broadcast %cst_14 : f32 to vector<1x16xf32>
    %21 = arith.addf %17, %20 : vector<1x16xf32>
    %22 = math.rsqrt %21 : vector<1x16xf32>
    %23 = arith.mulf %19, %22 : vector<1x16xf32>
    %24 = vector.broadcast %23 : vector<1x16xf32> to vector<32x16xf32>
    %25 = arith.mulf %12, %24 : vector<32x16xf32>
    %26 = vector.extract_strided_slice %18 {offsets = [1, 0], sizes = [1, 16], strides = [1, 1]} : vector<2x16xf32> to vector<1x16xf32>
    %27 = vector.broadcast %26 : vector<1x16xf32> to vector<32x16xf32>
    %28 = arith.addf %25, %27 : vector<32x16xf32>
    %cst_15 = arith.constant 0.000000e+00 : f32
    %29 = vector.broadcast %cst_15 : f32 to vector<32x16xf32>
    %30 = arith.maximumf %28, %29 : vector<32x16xf32>
    %31 = vector.shape_cast %30 : vector<32x16xf32> to vector<2x16x16xf32>
    %32 = arith.truncf %31 : vector<2x16x16xf32> to vector<2x16x16xbf16>
    %cst_16 = arith.constant 0.000000e+00 : bf16
    %33 = vector.broadcast %cst_16 : bf16 to vector<2x1x16xbf16>
    %c0_17 = arith.constant 0 : index
    %c0_18 = arith.constant 0 : index
    %c0_19 = arith.constant 0 : index
    %34 = vector.load %arg6[%c0_17, %c0_18, %c0_19] : memref<2x18x16xbf16, #tpu.memory_space<vmem>>, vector<2x1x16xbf16>
    tpu.vector_store %arg6[%c0_17, %c0_18, %c0_19], %33 {strides = array<i32>} : memref<2x18x16xbf16, #tpu.memory_space<vmem>>, vector<2x1x16xbf16>,
    %c0_20 = arith.constant 0 : index
    %c17 = arith.constant 17 : index
    %c0_21 = arith.constant 0 : index
    %35 = vector.load %arg6[%c0_20, %c17, %c0_21] : memref<2x18x16xbf16, #tpu.memory_space<vmem>>, vector<2x1x16xbf16>
    tpu.vector_store %arg6[%c0_20, %c17, %c0_21], %33 {strides = array<i32>} : memref<2x18x16xbf16, #tpu.memory_space<vmem>>, vector<2x1x16xbf16>,
    %c0_22 = arith.constant 0 : index
    %c1_23 = arith.constant 1 : index
    %c0_24 = arith.constant 0 : index
    %36 = vector.load %arg6[%c0_22, %c1_23, %c0_24] : memref<2x18x16xbf16, #tpu.memory_space<vmem>>, vector<2x16x16xbf16>
    tpu.vector_store %arg6[%c0_22, %c1_23, %c0_24], %32 {strides = array<i32>} : memref<2x18x16xbf16, #tpu.memory_space<vmem>>, vector<2x16x16xbf16>,
    %c0_25 = arith.constant 0 : index
    %c0_26 = arith.constant 0 : index
    %c0_27 = arith.constant 0 : index
    %37 = vector.load %arg6[%c0_25, %c0_26, %c0_27] : memref<2x18x16xbf16, #tpu.memory_space<vmem>>, vector<2x16x16xbf16>
    %c0_28 = arith.constant 0 : index
    %c1_29 = arith.constant 1 : index
    %c0_30 = arith.constant 0 : index
    %38 = vector.load %arg6[%c0_28, %c1_29, %c0_30] : memref<2x18x16xbf16, #tpu.memory_space<vmem>>, vector<2x16x16xbf16>
    %c0_31 = arith.constant 0 : index
    %c2_32 = arith.constant 2 : index
    %c0_33 = arith.constant 0 : index
    %39 = vector.load %arg6[%c0_31, %c2_32, %c0_33] : memref<2x18x16xbf16, #tpu.memory_space<vmem>>, vector<2x16x16xbf16>
    %40 = tpu.concatenate %37, %38, %39 in 2 : vector<2x16x16xbf16>, vector<2x16x16xbf16>, vector<2x16x16xbf16> -> vector<2x16x48xbf16>
    %41 = vector.shape_cast %40 : vector<2x16x48xbf16> to vector<32x48xbf16>
    %c0_34 = arith.constant 0 : index
    %c0_35 = arith.constant 0 : index
    %42 = vector.load %arg3[%c0_34, %c0_35] : memref<48x32xbf16, #tpu.memory_space<vmem>>, vector<48x32xbf16>
    %cst_36 = arith.constant dense<0.000000e+00> : vector<32x32xf32>
    %43 = tpu.matmul %41, %42, %cst_36 {dimension_numbers = #tpu.dot_dimension_numbers<[1], [0], [0], [1], [0, 0, 1, 1], [], []>} : vector<32x48xbf16>, vector<48x32xbf16>, vector<32x32xf32> -> vector<32x32xf32>
    %cst_37 = arith.constant dense<0.000000e+00> : vector<32xf32>
    %44 = vector.multi_reduction <add>, %43, %cst_37 [0] : vector<32x32xf32> to vector<32xf32>
    %45 = vector.shape_cast %44 : vector<32xf32> to vector<1x32xf32>
    %cst_38 = arith.constant 3.125000e-02 : f32
    %46 = vector.broadcast %cst_38 : f32 to vector<1x32xf32>
    %47 = arith.mulf %45, %46 : vector<1x32xf32>
    %48 = vector.broadcast %47 : vector<1x32xf32> to vector<32x32xf32>
    %49 = arith.subf %43, %48 : vector<32x32xf32>
    %50 = arith.mulf %49, %49 : vector<32x32xf32>
    %cst_39 = arith.constant dense<0.000000e+00> : vector<32xf32>
    %51 = vector.multi_reduction <add>, %50, %cst_39 [0] : vector<32x32xf32> to vector<32xf32>
    %52 = vector.shape_cast %51 : vector<32xf32> to vector<1x32xf32>
    %cst_40 = arith.constant 3.125000e-02 : f32
    %53 = vector.broadcast %cst_40 : f32 to vector<1x32xf32>
    %54 = arith.mulf %52, %53 : vector<1x32xf32>
    %c0_41 = arith.constant 0 : index
    %c0_42 = arith.constant 0 : index
    %55 = vector.load %arg4[%c0_41, %c0_42] : memref<2x32xf32, #tpu.memory_space<vmem>>, vector<2x32xf32>
    %56 = vector.extract_strided_slice %55 {offsets = [0, 0], sizes = [1, 32], strides = [1, 1]} : vector<2x32xf32> to vector<1x32xf32>
    %cst_43 = arith.constant 9.99999974E-6 : f32
    %57 = vector.broadcast %cst_43 : f32 to vector<1x32xf32>
    %58 = arith.addf %54, %57 : vector<1x32xf32>
    %59 = math.rsqrt %58 : vector<1x32xf32>
    %60 = arith.mulf %56, %59 : vector<1x32xf32>
    %61 = vector.broadcast %60 : vector<1x32xf32> to vector<32x32xf32>
    %62 = arith.mulf %49, %61 : vector<32x32xf32>
    %63 = vector.extract_strided_slice %55 {offsets = [1, 0], sizes = [1, 32], strides = [1, 1]} : vector<2x32xf32> to vector<1x32xf32>
    %64 = vector.broadcast %63 : vector<1x32xf32> to vector<32x32xf32>
    %65 = arith.addf %62, %64 : vector<32x32xf32>
    %cst_44 = arith.constant 0.000000e+00 : f32
    %66 = vector.broadcast %cst_44 : f32 to vector<32x32xf32>
    %67 = arith.maximumf %65, %66 : vector<32x32xf32>
    %68 = vector.shape_cast %67 : vector<32x32xf32> to vector<2x16x32xf32>
    %c0_45 = arith.constant 0 : index
    %c0_46 = arith.constant 0 : index
    %c0_47 = arith.constant 0 : index
    %69 = vector.load %arg5[%c0_45, %c0_46, %c0_47] : memref<2x16x32xf32, #tpu.memory_space<vmem>>, vector<2x16x32xf32>
    tpu.vector_store %arg5[%c0_45, %c0_46, %c0_47], %68 {strides = array<i32>} : memref<2x16x32xf32, #tpu.memory_space<vmem>>, vector<2x16x32xf32>,
    return
  }
}

</mosaic_0001>

<bundles_post_ra>
// kernel: tpu_custom_call.1
= control target key start
LH: loop header
LB: loop body
LE: loop exit
PB: predicated region body
PF: predicated region fallthrough
CT: control target
= control target key end

     0   :  { %vm46_vm0 = vsmask.f32 7424  ;;  %vm81_vm1 = vcmask 1046528   ;;  %vm114_vm2 = vcmask 1045504   ;;  %s652_s11 = smov 8   ;;  %s815_s0 = inlined_call_operand.vmem [shape: bf16[2,18,4], index: 0, kind: input, shape index: {}]   ;;  %s816_s1 = inlined_call_operand.vmem [shape: bf16[12,16], index: 1, kind: input, shape index: {}]   ;;  %s817_s2 = inlined_call_operand.vmem [shape: f32[2,16], index: 2, kind: input, shape index: {}]   ;;  %s818_s3 = inlined_call_operand.vmem [shape: bf16[48,32], index: 3, kind: input, shape index: {}]   ;;  %s819_s4 = inlined_call_operand.vmem [shape: f32[2,32], index: 4, kind: input, shape index: {}]   ;;  %s820_s5 = inlined_call_operand.hbm [shape: f32[2,16,32], index: 5, kind: output, shape index: {}]  }
   0x1   :  { %v22_v0 = vld [vmem:[%s815_s0] sm:$0xf]  ;;  %v23_v1 = vld [vmem:[%s815_s0 + $0x4] sm:$0xf]  ;;  %v24_v5 = vld [vmem:[%s815_s0 + $0xc] sm:$0xf] }
   0x2   :  { %v551_v2 = vcombine.low %v22_v0, %v23_v1  ;;  %v611_v3 = vld [vmem:[%s815_s0 + $0x8] ss:$0 sps:$4 sm:$0x11]   ;;  %v28_v4 = vld [vmem:[%s815_s0] sm:$0xe] }
   0x3   :  { %v55_v8 = vshll.u32 %v611_v3, 16  ;;  %v555_v9 = vcombine.low %v28_v4, %v23_v1  ;;  %v25_v10 = vld [vmem:[%s815_s0 + $0x10] sm:$0xf]  ;;  %v83_v11 = vrot.slane %v611_v3, 1  ;;  %v29_v17 = vld [vmem:[%s815_s0 + $0xc] sm:$0xe] }
   0x4   :  { %v48_v6 = vshrl.u32 %v551_v2, 16  ;;  %v50_v7 = vshll.u32 %v551_v2, 16  ;;  %v552_v12 = vcombine.low %v24_v5, %v25_v10  ;;  %v614_v13 = vld [vmem:[%s815_s0 + $0x14] ss:$0 sps:$4 sm:$0x11]   ;;  %v556_v21 = vcombine.low %v29_v17, %v25_v10  ;;  %s653_s0 = smov 4  }
   0x5   :  { %v57_v15 = vrot.slane %v55_v8, 1  ;;  %v82_v16 = vrot.slane %v555_v9, 1  ;;  %v67_v20 = vshll.u32 %v614_v13, 16  ;;  %v86_v24 = vrot.slane %v614_v13, 1  ;;  %v616_v25 = vld [vmem:[%s816_s1] sm:$0x3f]  }
   0x6   :  { %v52_v14 = vrot.slane %v50_v7, 1  ;;  %v60_v18 = vshrl.u32 %v552_v12, 16  ;;  %v62_v19 = vshll.u32 %v552_v12, 16  ;;  %v85_v28 = vrot.slane %v556_v21, 1  ;;  %603 = vmatprep.subr.msk.bf16.mxu0 %vm114_vm2, %v616_v25 }
   0x7   :  { %v84_v23 = vsel %vm81_vm1, %v82_v16, %v83_v11  ;;  %v69_v27 = vrot.slane %v67_v20, 1  ;;  %v116_v30 = vsel %vm114_vm2, %v616_v25, 0 }
   0x8   :  { %v53_v22 = vor.u32 %v52_v14, %v48_v6  ;;  %88 = vrot.lane.b32.xlu1 %v84_v23, %s652_s11  ;;  %v64_v26 = vrot.slane %v62_v19, 1  ;;  %v87_v32 = vsel %vm81_vm1, %v85_v28, %v86_v24  ;;  %588 = vmatpush3.bf16.msra.mxu0 %v116_v30 }
   0xa   :  { %v58_v29 = vsel %vm46_vm0, %v53_v22, %v57_v15  ;;  %v65_v31 = vor.u32 %v64_v26, %v60_v18 }
   0xb   :  { %71 = vrot.lane.b32.xlu0 %v58_v29, %s653_s0 }
   0xc   :  { %10 = vsyncpa [#allocation4], 0  ;;  %v70_v33 = vsel %vm46_vm0, %v65_v31, %v69_v27  ;;  %90 = vrot.lane.b32.xlu1 %v87_v32, %s652_s11  ;;  %vm92_vm3 = vcmask 31744   ;;  %vm97_vm4 = vcmask 64512   ;;  %vm109_vm5 = vcmask 97280   ;;  %v623_v51 = vld [vmem:[%s818_s3 + $0x10] sm:$0xff]  }
   0xd   :  { %vm230_vm6 = vcmask 122880   ;;  %vm231_vm7 = vsmask.f32 256  ;;  %vm239_vm8 = vsmask.f32 7938  ;;  %v624_v52 = vld [vmem:[%s818_s3 + $0x8] sm:$0xff]   ;;  %593 = vmatprep.subr.bf16.mxu1 %v623_v51  ;;  %v208_v30 = vlaneseq }
   0xe   :  { %vm722_vm9 = vmand %vm230_vm6, %vm231_vm7  ;;  %v233_v43 = vld [vmem:[#allocation2] sm:$0x1]  ;;  %v236_v44 = vld [vmem:[#allocation2 + $0xc] sm:$0x1]  ;;  %594 = vmatpush3.bf16.msra.mxu1 %v623_v51  ;;  %vm167_vm11 = vcmask 130048   ;;  %vm299_vm13 = vcmask 125952  }
   0xf   :  { %73 = vrot.lane.b32.xlu0 %v70_v33, %s653_s0  ;;  %v234_v45 = vsel %vm722_vm9, 0, %v233_v43  ;;  %v237_v46 = vsel %vm722_vm9, 0, %v236_v44  ;;  %vm240_vm10 = vmand %vm230_vm6, %vm239_vm8  ;;  %v241_v47 = vld [vmem:[#allocation2 + $0x8] sm:$0x1]  ;;  %v244_v48 = vld [vmem:[#allocation2 + $0x14] sm:$0x1]  ;;  %595 = vmatprep.subr.bf16.mxu1 %v624_v52 }
  0x10   :  { %235 = vst [vmem:[#allocation2] sm:$0x1] %v234_v45  ;;  %238 = vst [vmem:[#allocation2 + $0xc] sm:$0x1] %v237_v46  ;;  %v242_v49 = vsel %vm240_vm10, 0, %v241_v47  ;;  %v245_v50 = vsel %vm240_vm10, 0, %v244_v48 }
  0x11   :  { %243 = vst [vmem:[#allocation2 + $0x8] sm:$0x1] %v242_v49  ;;  %246 = vst [vmem:[#allocation2 + $0x14] sm:$0x1] %v245_v50  ;;  %v745_v31 = vshrl.u32 %v208_v30, 7  ;;  %s655_s18 = smov 32  }
  0x12   :  { %596 = vmatpush3.bf16.msra.mxu1 %v624_v52  ;;  %v204_v32 = vld [vmem:[%s817_s2] sm:$0x3]  ;;  %vm257_vm12 = vsmask.f32 4368  ;;  %vm763_vm15 = vmand %vm299_vm13, %vm239_vm8  ;;  %vm388_vm2 = vcmask 261120   ;;  %s656_s21 = smov [#allocation3]  }
  0x13   :  { %v210_v33 = vsub.s32 0, %v745_v31  ;;  %vm757_vm14 = vmor %vm231_vm7, %vm257_vm12  ;;  %s540_s22 = sshll.u32 %s656_s21, 4  ;;  %s541_s22 = int_to_ptr.vmem [resolvable:$true] %s540_s22 }
  0x14   :  { %p635_p1 = scmp.lt.s32.totalorder %s541_s22, %s541_s22 }
  0x7a   :  { %v89_v34 = vpop.permute.xlu1 %88 }
  0x7d   :  { %v72_v35 = vpop.permute.xlu0 %71 }
  0x7e   :  { %v94_v36 = vsel %vm92_vm3, %v551_v2, %v72_v35  ;;  %v91_v38 = vpop.permute.xlu1 %90 }
  0x7f   :  { %v99_v37 = vsel %vm97_vm4, %v94_v36, %v89_v34  ;;  %v218_v34 = vsub.s32 1, %v745_v31 }
  0x80   :  { %589 = vmatprep.mubr.msk.bf16.mxu0 %vm109_vm5, %v99_v37 }
  0x81   :  { %v74_v39 = vpop.permute.xlu0 %73 }
  0x82   :  { %v96_v40 = vsel %vm92_vm3, %v552_v12, %v74_v39  ;;  %vm417_vm3 = vcmask 392192  }
  0x83   :  { %v101_v41 = vsel %vm97_vm4, %v96_v40, %v91_v38  ;;  %v219_v38 = vrot.slane %v204_v32, %v218_v34 }
  0x84   :  { %590 = vmatmul.mubr.msk.bf16.vlgmr.msra.gmra.mxu0 %vm109_vm5, %v101_v41 }
 0x144   :  { %v591_v53 = vpop.f32.mrf.mxu0 }
 0x145   :  { %v171_v60 = vsel %vm167_vm11, %v591_v53, 0.0 }
 0x146   :  { %v152_v54 = vpop.f32.mrf.mxu0 }
 0x147   :  { %v168_v57 = vsel %vm167_vm11, %v152_v54, 0.0 }
 0x148   :  { %v592_v55 = vpop.f32.mrf.mxu0 }
 0x149   :  { %v173_v62 = vsel %vm167_vm11, %v592_v55, 0.0 }
 0x14a   :  { %v155_v56 = vpop.f32.mrf.mxu0 }
 0x14b   :  { %v169_v58 = vsel %vm167_vm11, %v155_v56, 0.0 }
 0x14c   :  { %v170_v59 = vadd.f32 %v169_v58, %v168_v57 }
 0x14e   :  { %v172_v61 = vadd.f32 %v171_v60, %v170_v59 }
 0x150   :  { %v174_v63 = vadd.f32 %v173_v62, %v172_v61 }
 0x152   :  { %v175_v0 = vrot.slane %v174_v63, 4 }
 0x154   :  { %v176_v1 = vadd.f32 %v175_v0, %v174_v63 }
 0x156   :  { %v177_v2 = vrot.slane %v176_v1, 2 }
 0x158   :  { %v178_v3 = vadd.f32 %v177_v2, %v176_v1  ;;  %v301_v1 = vld [vmem:[#allocation2] sm:$0xf] }
 0x15a   :  { %v179_v4 = vrot.slane %v178_v3, 1 }
 0x15c   :  { %v180_v5 = vadd.f32 %v179_v4, %v178_v3 }
 0x15e   :  { %v181_v6 = vmul.f32 0.03125, %v180_v5 }
 0x160   :  { %v182_v7 = vsub.f32 %v152_v54, %v181_v6  ;;  %v183_v8 = vsub.f32 %v155_v56, %v181_v6  ;;  %v184_v9 = vsub.f32 %v591_v53, %v181_v6  ;;  %v185_v10 = vsub.f32 %v592_v55, %v181_v6 }
 0x162   :  { %v186_v11 = vmul.f32 %v182_v7, %v182_v7  ;;  %v187_v12 = vmul.f32 %v183_v8, %v183_v8  ;;  %v188_v13 = vmul.f32 %v184_v9, %v184_v9  ;;  %v189_v14 = vmul.f32 %v185_v10, %v185_v10 }
 0x164   :  { %v190_v15 = vsel %vm167_vm11, %v186_v11, 0.0  ;;  %v191_v16 = vsel %vm167_vm11, %v187_v12, 0.0  ;;  %v193_v18 = vsel %vm167_vm11, %v188_v13, 0.0  ;;  %v195_v20 = vsel %vm167_vm11, %v189_v14, 0.0  ;;  %v309_v12 = vld [vmem:[#allocation2 + $0xc] sm:$0xf] }
 0x165   :  { %v192_v17 = vadd.f32 %v191_v16, %v190_v15  ;;  %v313_v13 = vld [vmem:[#allocation2 + $0x14] sm:$0x1] }
 0x167   :  { %v194_v19 = vadd.f32 %v193_v18, %v192_v17 }
 0x169   :  { %v196_v21 = vadd.f32 %v195_v20, %v194_v19 }
 0x16b   :  { %v197_v22 = vrot.slane %v196_v21, 4 }
 0x16d   :  { %v198_v23 = vadd.f32 %v197_v22, %v196_v21 }
 0x16f   :  { %v199_v24 = vrot.slane %v198_v23, 2 }
 0x171   :  { %v200_v25 = vadd.f32 %v199_v24, %v198_v23  ;;  %v625_v24 = vld [vmem:[%s818_s3] sm:$0xff]   ;;  %s654_s3 = smov 16  }
 0x172   :  { %597 = vmatprep.subr.bf16.mxu1 %v625_v24 }
 0x173   :  { %v201_v26 = vrot.slane %v200_v25, 1  ;;  %598 = vmatpush3.bf16.msra.mxu1 %v625_v24 }
 0x175   :  { %v202_v27 = vadd.f32 %v201_v26, %v200_v25 }
 0x177   :  { %v203_v28 = vmul.f32 0.03125, %v202_v27 }
 0x179   :  { %v205_v29 = vadd.f32 1e-05, %v203_v28 }
 0x17b   :  { %626 = vrsqrt.f32 %v205_v29 }
 0x188   :  { %v627_v35 = vpop.eup %626 }
 0x189   :  { %v207_v36 = vmul.f32 %v627_v35, %v204_v32 }
 0x18b   :  { %v211_v37 = vrot.slane %v207_v36, %v210_v33 }
 0x18d   :  { %v212_v39 = vmul.f32 %v211_v37, %v182_v7  ;;  %v213_v40 = vmul.f32 %v211_v37, %v183_v8  ;;  %v214_v41 = vmul.f32 %v211_v37, %v184_v9  ;;  %v215_v43 = vmul.f32 %v211_v37, %v185_v10  ;;  %v306_v7 = vld [vmem:[#allocation2 + $0x8] sm:$0x1] }
 0x18f   :  { %v220_v44 = vadd.f32 %v219_v38, %v212_v39  ;;  %v221_v45 = vadd.f32 %v219_v38, %v213_v40  ;;  %v222_v46 = vadd.f32 %v219_v38, %v214_v41  ;;  %v223_v47 = vadd.f32 %v219_v38, %v215_v43 }
 0x191   :  { %v224_v48 = vmax.f32 %v220_v44, 0.0  ;;  %v225_v49 = vmax.f32 %v221_v45, 0.0  ;;  %v226_v50 = vmax.f32 %v222_v46, 0.0  ;;  %v227_v51 = vmax.f32 %v223_v47, 0.0 }
 0x193   :  { %v575_v52 = vpack.c.bf16 %v224_v48, %v224_v48  ;;  %v576_v53 = vpack.c.bf16 %v225_v49, %v225_v49  ;;  %v577_v54 = vpack.c.bf16 %v226_v50, %v226_v50  ;;  %v578_v55 = vpack.c.bf16 %v227_v51, %v227_v51 }
 0x195   :  { %v260_v56 = vshrl.u32 %v575_v52, 16  ;;  %v268_v57 = vshrl.u32 %v576_v53, 16  ;;  %v277_v58 = vshrl.u32 %v577_v54, 16  ;;  %v285_v59 = vshrl.u32 %v578_v55, 16 }
 0x196   :  { %v263_v62 = vshll.u32 %v575_v52, 16  ;;  %v271_v0 = vshll.u32 %v576_v53, 16  ;;  %v280_v3 = vshll.u32 %v577_v54, 16  ;;  %v288_v5 = vshll.u32 %v578_v55, 16 }
 0x197   :  { %v262_v61 = vrot.slane %v260_v56, 7  ;;  %v270_v63 = vrot.slane %v268_v57, 7  ;;  %v279_v2 = vrot.slane %v277_v58, 7  ;;  %v287_v4 = vrot.slane %v285_v59, 7 }
 0x199   :  { %v265_v8 = vor.u32 %v263_v62, %v262_v61  ;;  %v266_v9 = vrot.slane %v262_v61, 4  ;;  %v273_v10 = vor.u32 %v271_v0, %v270_v63  ;;  %v275_v11 = vrot.slane %v270_v63, 4 }
 0x19a   :  { %v282_v14 = vor.u32 %v280_v3, %v279_v2  ;;  %v283_v15 = vrot.slane %v279_v2, 4  ;;  %v290_v16 = vor.u32 %v288_v5, %v287_v4  ;;  %v292_v17 = vrot.slane %v287_v4, 4 }
 0x19b   :  { %v274_v18 = vsel %vm757_vm14, %v266_v9, %v273_v10  ;;  %v302_v19 = vsel %vm763_vm15, %v265_v8, %v301_v1  ;;  %v307_v20 = vsel %vm722_vm9, %v275_v11, %v306_v7 }
 0x19c   :  { %v291_v21 = vsel %vm757_vm14, %v283_v15, %v290_v16  ;;  %303 = vst [vmem:[#allocation2] sm:$0xf] %v302_v19  ;;  %305 = vst.msk [vmem:[#allocation2 + $0x4] sm:$0xf] %vm299_vm13, %v274_v18  ;;  %v310_v22 = vsel %vm763_vm15, %v282_v14, %v309_v12  ;;  %v314_v23 = vsel %vm722_vm9, %v292_v17, %v313_v13 }
 0x19d   :  { %308 = vst [vmem:[#allocation2 + $0x8] sm:$0x1] %v307_v20  ;;  %311 = vst [vmem:[#allocation2 + $0xc] sm:$0xf] %v310_v22 }
 0x19e   :  { %312 = vst.msk [vmem:[#allocation2 + $0x10] sm:$0xf] %vm299_vm13, %v291_v21  ;;  %315 = vst [vmem:[#allocation2 + $0x14] sm:$0x1] %v314_v23 }
 0x1a3   :  { %v316_v25 = vld [vmem:[#allocation2] sm:$0xf]  ;;  %v317_v26 = vld [vmem:[#allocation2 + $0x4] sm:$0xf] }
 0x1a4   :  { %v318_v27 = vld [vmem:[#allocation2 + $0xc] sm:$0xf]  ;;  %v564_v29 = vcombine.low %v316_v25, %v317_v26  ;;  %v620_v35 = vld [vmem:[#allocation2 + $0x8] ss:$0 sps:$4 sm:$0x11]  }
 0x1a5   :  { %v319_v28 = vld [vmem:[#allocation2 + $0x10] sm:$0xf]  ;;  %v618_v32 = vld [vmem:[#allocation2 + $0x14] ss:$0 sps:$4 sm:$0x11]   ;;  %v348_v40 = vshll.u32 %v620_v35, 16 }
 0x1a6   :  { %v565_v30 = vcombine.low %v318_v27, %v319_v28  ;;  %v343_v42 = vshll.u32 %v564_v29, 16  ;;  %v323_v36 = vld [vmem:[#allocation2 + $0xc] sm:$0xe]  ;;  %v322_v37 = vld [vmem:[#allocation2] sm:$0xe]  ;;  %v360_v39 = vshll.u32 %v618_v32, 16 }
 0x1a7   :  { %v341_v41 = vshrl.u32 %v564_v29, 16  ;;  %v568_v44 = vcombine.low %v322_v37, %v317_v26  ;;  %v569_v47 = vcombine.low %v323_v36, %v319_v28  ;;  %v350_v49 = vrot.slane %v348_v40, 1 }
 0x1a8   :  { %v355_v38 = vshll.u32 %v565_v30, 16  ;;  %v345_v43 = vrot.slane %v343_v42, 1  ;;  %v353_v45 = vshrl.u32 %v565_v30, 16  ;;  %v362_v51 = vrot.slane %v360_v39, 1 }
 0x1a9   :  { %v374_v53 = vrot.slane %v568_v44, 1  ;;  %v375_v54 = vrot.slane %v620_v35, 1  ;;  %v377_v56 = vrot.slane %v569_v47, 1  ;;  %v378_v57 = vrot.slane %v618_v32, 1 }
 0x1aa   :  { %v357_v46 = vrot.slane %v355_v38, 1  ;;  %v346_v48 = vor.u32 %v345_v43, %v341_v41 }
 0x1ab   :  { %v376_v58 = vsel %vm81_vm1, %v374_v53, %v375_v54  ;;  %v379_v59 = vsel %vm81_vm1, %v377_v56, %v378_v57 }
 0x1ac   :  { %v358_v50 = vor.u32 %v357_v46, %v353_v45  ;;  %v351_v52 = vsel %vm46_vm0, %v346_v48, %v350_v49  ;;  %v507_v48 = vld [vmem:[%s819_s4] sm:$0x3]  ;;  %s630_s4 = scalar_lea.vmem %s541_s22, 512 }
 0x1ad   :  { %364 = vrot.lane.b32.xlu0 %v351_v52, %s654_s3  ;;  %v522_v52 = vrot.slane %v507_v48, %v218_v34  ;;  %p631_p0 = scmp.ne.s32.totalorder %s541_s22, %s630_s4  ;;  %p636_p2 = scmp.lt.s32.totalorder %s630_s4, %s630_s4 }
 0x1ae   :  { %v363_v55 = vsel %vm46_vm0, %v358_v50, %v362_v51 }
 0x1af   :  { %366 = vrot.lane.b32.xlu1 %v363_v55, %s654_s3  ;;  %p637_p3 = por %p636_p2, %p635_p1 }
 0x1b1   :  { %380 = vrot.lane.b32.xlu0 %v376_v58, %s655_s18  ;;  %p638_p4 = pnand %p637_p3, %p631_p0 }
 0x1b3   :  { %382 = vrot.lane.b32.xlu1 %v379_v59, %s655_s18 }
 0x21f   :  { %v365_v60 = vpop.permute.xlu0 %364 }
 0x220   :  { %v385_v62 = vsel %vm167_vm11, %v564_v29, %v365_v60 }
 0x221   :  { %v367_v61 = vpop.permute.xlu1 %366 }
 0x222   :  { %v387_v0 = vsel %vm167_vm11, %v565_v30, %v367_v61 }
 0x223   :  { %v381_v63 = vpop.permute.xlu0 %380 }
 0x224   :  { %v390_v2 = vsel %vm388_vm2, %v385_v62, %v381_v63 }
 0x225   :  { %v383_v1 = vpop.permute.xlu1 %382  ;;  %599 = vmatprep.mubr.msk.bf16.mxu1 %vm417_vm3, %v390_v2 }
 0x226   :  { %v392_v3 = vsel %vm388_vm2, %v387_v0, %v383_v1 }
 0x227   :  { %600 = vmatmul.mubr.msk.bf16.vlgmr.msra.gmra.mxu1 %vm417_vm3, %v392_v3 }
 0x2e7   :  { %v601_v4 = vpop.f32.mrf.mxu1 }
 0x2e8   :  { %v474_v11 = vsel %vm388_vm2, %v601_v4, 0.0 }
 0x2e9   :  { %v456_v5 = vpop.f32.mrf.mxu1 }
 0x2ea   :  { %v471_v8 = vsel %vm388_vm2, %v456_v5, 0.0 }
 0x2eb   :  { %v602_v6 = vpop.f32.mrf.mxu1 }
 0x2ec   :  { %v476_v13 = vsel %vm388_vm2, %v602_v6, 0.0 }
 0x2ed   :  { %v459_v7 = vpop.f32.mrf.mxu1 }
 0x2ee   :  { %v472_v9 = vsel %vm388_vm2, %v459_v7, 0.0 }
 0x2ef   :  { %v473_v10 = vadd.f32 %v472_v9, %v471_v8 }
 0x2f1   :  { %v475_v12 = vadd.f32 %v474_v11, %v473_v10 }
 0x2f3   :  { %v477_v14 = vadd.f32 %v476_v13, %v475_v12 }
 0x2f5   :  { %v478_v15 = vrot.slane %v477_v14, 4 }
 0x2f7   :  { %v479_v16 = vadd.f32 %v478_v15, %v477_v14 }
 0x2f9   :  { %v480_v17 = vrot.slane %v479_v16, 2 }
 0x2fb   :  { %v481_v18 = vadd.f32 %v480_v17, %v479_v16 }
 0x2fd   :  { %v482_v19 = vrot.slane %v481_v18, 1 }
 0x2ff   :  { %v483_v20 = vadd.f32 %v482_v19, %v481_v18 }
 0x301   :  { %v484_v21 = vmul.f32 0.03125, %v483_v20 }
 0x303   :  { %v485_v22 = vsub.f32 %v456_v5, %v484_v21  ;;  %v486_v23 = vsub.f32 %v459_v7, %v484_v21  ;;  %v487_v24 = vsub.f32 %v601_v4, %v484_v21  ;;  %v488_v25 = vsub.f32 %v602_v6, %v484_v21 }
 0x305   :  { %v489_v26 = vmul.f32 %v485_v22, %v485_v22  ;;  %v490_v27 = vmul.f32 %v486_v23, %v486_v23  ;;  %v491_v28 = vmul.f32 %v487_v24, %v487_v24  ;;  %v492_v29 = vmul.f32 %v488_v25, %v488_v25 }
 0x307   :  { %v493_v30 = vsel %vm388_vm2, %v489_v26, 0.0  ;;  %v494_v32 = vsel %vm388_vm2, %v490_v27, 0.0  ;;  %v496_v42 = vsel %vm388_vm2, %v491_v28, 0.0  ;;  %v498_v37 = vsel %vm388_vm2, %v492_v29, 0.0 }
 0x308   :  { %v495_v35 = vadd.f32 %v494_v32, %v493_v30 }
 0x30a   :  { %v497_v36 = vadd.f32 %v496_v42, %v495_v35 }
 0x30c   :  { %v499_v38 = vadd.f32 %v498_v37, %v497_v36 }
 0x30e   :  { %v500_v39 = vrot.slane %v499_v38, 4 }
 0x310   :  { %v501_v40 = vadd.f32 %v500_v39, %v499_v38 }
 0x312   :  { %v502_v41 = vrot.slane %v501_v40, 2 }
 0x314   :  { %v503_v43 = vadd.f32 %v502_v41, %v501_v40 }
 0x316   :  { %v504_v44 = vrot.slane %v503_v43, 1 }
 0x318   :  { %v505_v45 = vadd.f32 %v504_v44, %v503_v43 }
 0x31a   :  { %v506_v46 = vmul.f32 0.03125, %v505_v45 }
 0x31c   :  { %v508_v47 = vadd.f32 1e-05, %v506_v46 }
 0x31e   :  { %628 = vrsqrt.f32 %v508_v47 }
 0x32b   :  { %v629_v49 = vpop.eup %628 }
 0x32c   :  { %v510_v50 = vmul.f32 %v629_v49, %v507_v48 }
 0x32e   :  { %v514_v51 = vrot.slane %v510_v50, %v210_v33 }
 0x330   :  { %v515_v53 = vmul.f32 %v514_v51, %v485_v22  ;;  %v516_v54 = vmul.f32 %v514_v51, %v486_v23  ;;  %v517_v55 = vmul.f32 %v514_v51, %v487_v24  ;;  %v518_v56 = vmul.f32 %v514_v51, %v488_v25 }
 0x332   :  { %v523_v57 = vadd.f32 %v522_v52, %v515_v53  ;;  %v524_v58 = vadd.f32 %v522_v52, %v516_v54  ;;  %v525_v59 = vadd.f32 %v522_v52, %v517_v55  ;;  %v526_v60 = vadd.f32 %v522_v52, %v518_v56 }
 0x334   :  { %v527_v61 = vmax.f32 %v523_v57, 0.0  ;;  %v528_v62 = vmax.f32 %v524_v58, 0.0  ;;  %v529_v63 = vmax.f32 %v525_v59, 0.0  ;;  %v530_v0 = vmax.f32 %v526_v60, 0.0 }
 0x336   :  { %532 = vst.msk [vmem:[#allocation3 + $0x8] sm:$0xff] %vm388_vm2, %v528_v62  ;;  %531 = vst.msk [vmem:[#allocation3] sm:$0xff] %vm388_vm2, %v527_v61 }
 0x337   :  { %533 = vst.msk [vmem:[#allocation3 + $0x10] sm:$0xff] %vm388_vm2, %v529_v63  ;;  %534 = vst.msk [vmem:[#allocation3 + $0x18] sm:$0xff] %vm388_vm2, %v530_v0 }
 0x338   :  { %641 = shalt.err (!%p638_p4)
}
 0x339   :  { %s657_s23 = smov 128  }
 0x33a   :  { %546 = dma.vmem_to_hbm [thread:$0]  %s541_s22, 512, %s820_s5, [#allocation4], %s657_s23, %s657_s23, %s652_s11  }
 0x33b   :  { %650 = dma.done.wait [#allocation4], 512  }
 0x33c   :  { %651 = vsyncadd [#allocation4], 4294966784 }
 0x33d   :  { %550 = vsyncpa [#allocation4], 1 }

</bundles_post_ra>
